<compile_context>
chip_gen: v7x
topology: tpu7x:2x2x1
jax: 0.10.0
libtpu: 0.0.40
codegen_flags: <defaults>
</compile_context>

<pallas_src>
import functools
import math

import jax
import jax.numpy as jnp
from jax.experimental import pallas as pl
from jax.experimental.pallas import tpu as pltpu


_LANE = 128


def _round_up(v, m):
    return (v + m - 1) // m * m


def _fused_mlp_kernel(*refs, kinds, use_bf16):
    """refs = (x_ref, w0, b0, w1, b1, ..., o_ref).

    Feature-major layout: x_ref is (d_in, tile), o_ref is (d_out, tile).
    Weights are (out, in) except the "reduce" output layer, which is an (in, 1) column;
    biases are (out, 1).

    kinds[l] selects how layer l is computed:
      "fma"    - tiny-d_in first layer: unrolled VPU outer-product FMAs
      "dot"    - MXU matmul  y = W @ h  (+ bias)
      "reduce" - 1-wide output layer: VPU multiply + sublane reduction
    tanh is applied to every layer except the last.
    """
    x_ref, o_ref = refs[0], refs[-1]
    params = refs[1:-1]
    n_layers = len(kinds)

    h = x_ref[...].astype(jnp.float32)                       # (d_in, tile)
    for l, kind in enumerate(kinds):
        w = params[2 * l][...]
        b = params[2 * l + 1][...]
        if kind == "fma":
            y = b                                            # (out, 1) -> broadcasts
            for j in range(w.shape[1]):
                y = y + w[:, j:j + 1] * h[j:j + 1, :]        # (out,1)*(1,tile)
        elif kind == "reduce":
            y = jnp.sum(h * w, axis=0, keepdims=True) + b    # (1, tile), lane-dense
        else:  # "dot"
            if use_bf16:
                y = jnp.dot(w.astype(jnp.bfloat16), h.astype(jnp.bfloat16),
                            preferred_element_type=jnp.float32) + b
            else:
                y = jnp.dot(w, h, preferred_element_type=jnp.float32) + b
        if l < n_layers - 1:
            y = jnp.tanh(y)
        h = y
    o_ref[...] = h.astype(o_ref.dtype)


def _prep_params(params, layers):
    """Feature-major parameter layout + per-layer compute kind."""
    n_layers = len(params)
    flat, kinds = [], []
    for l, (w, b) in enumerate(params):
        d_in, d_out = w.shape                    # params stored as (in, out)
        if l == 0 and d_in <= 8:
            kind = "fma"
            wk = jnp.asarray(w, jnp.float32).T                  # (out, in)
            bk = jnp.asarray(b, jnp.float32).reshape(d_out, 1)
        elif l == n_layers - 1 and d_out == 1:
            kind = "reduce"
            wk = jnp.asarray(w, jnp.float32)                    # (in, 1) column
            bk = jnp.asarray(b, jnp.float32).reshape(1, 1)
        else:
            kind = "dot"
            wk = jnp.asarray(w, jnp.float32).T                  # (out, in)
            bk = jnp.asarray(b, jnp.float32).reshape(d_out, 1)
        flat += [wk, bk]
        kinds.append(kind)
    return flat, tuple(kinds)


def pinn_forward(x, params, layers, *, batch_tile=2048, use_bf16=False):
    """Fused forward pass: one pallas_call for the whole MLP."""
    n, d_in = x.shape
    d_out = layers[-1]
    flat_params, kinds = _prep_params(params, layers)

    # Batch tiling along the lane axis.  Large tiles amortize the ~0.35 us per-grid-step
    # overhead; capping at ceil(n/2) (128-aligned) keeps >= 2 "parallel" grid steps so
    # both v7x TensorCores are used.  Ragged batches are zero-padded and sliced after.
    half = _round_up((n + 1) // 2, _LANE)
    tile = max(_LANE, min(_round_up(batch_tile, _LANE), half))
    num_tiles = (n + tile - 1) // tile
    n_pad = num_tiles * tile

    # Feature-major input: (d_in, n_pad), batch on lanes (lane-dense loads).
    x_t = jnp.pad(jnp.asarray(x, jnp.float32), ((0, n_pad - n), (0, 0))).T

    in_specs = [pl.BlockSpec((d_in, tile), lambda i: (0, i))]
    for p in flat_params:
        # Constant index map: parameters are fetched once and stay VMEM-resident.
        in_specs.append(pl.BlockSpec(p.shape, lambda i: (0, 0)))

    # Cost estimate of the *actual* work (no padding inflation in this layout).
    flops = 2 * n_pad * sum(layers[i] * layers[i + 1] for i in range(len(layers) - 1))
    transcendentals = n_pad * sum(layers[1:-1])
    bytes_accessed = 4 * (n_pad * (d_in + d_out) + sum(int(p.size) for p in flat_params))

    kernel = functools.partial(_fused_mlp_kernel, kinds=kinds, use_bf16=use_bf16)
    out = pl.pallas_call(
        kernel,
        out_shape=jax.ShapeDtypeStruct((d_out, n_pad), jnp.float32),
        grid_spec=pltpu.PrefetchScalarGridSpec(
            num_scalar_prefetch=0,
            grid=(num_tiles,),
            in_specs=in_specs,
            out_specs=pl.BlockSpec((d_out, tile), lambda i: (0, i)),
        ),
        compiler_params=pltpu.CompilerParams(
            dimension_semantics=("parallel",),
        ),
        cost_estimate=pl.CostEstimate(
            flops=flops,
            transcendentals=transcendentals,
            bytes_accessed=bytes_accessed,
        ),
    )(x_t, *flat_params)
    return out.T[:n]                              # (n, d_out)


class PINN:
    """JAX/Pallas port of the PyTorch PINN (stack of Linear layers, tanh on all but last)."""

    def __init__(self, layers, key):
        self.layers = list(layers)
        self.params = []
        for i in range(len(layers) - 1):
            fan_in, fan_out = layers[i], layers[i + 1]
            key, wkey = jax.random.split(key)
            # Xavier (Glorot) normal init, zero bias — matches the torch reference.
            std = math.sqrt(2.0 / (fan_in + fan_out))
            w = std * jax.random.normal(wkey, (fan_in, fan_out), dtype=jnp.float32)
            b = jnp.zeros((fan_out,), dtype=jnp.float32)
            self.params.append((w, b))

    def __call__(self, x, *, batch_tile=2048, use_bf16=False):
        return pinn_forward(x, self.params, self.layers,
                            batch_tile=batch_tile, use_bf16=use_bf16)


def _reference_forward(x, params):
    h = x
    for w, b in params[:-1]:
        h = jnp.tanh(jnp.dot(h, w, precision=jax.lax.Precision.HIGHEST) + b)
    w, b = params[-1]
    return jnp.dot(h, w, precision=jax.lax.Precision.HIGHEST) + b


if __name__ == "__main__":
    key = jax.random.PRNGKey(0)
    key, xkey, x2key, pkey = jax.random.split(key, 4)

    # 2D PINN: inputs are (x, t) collocation points -> scalar solution u(x, t).
    layers = [2, 32, 32, 32, 1]
    model = PINN(layers, pkey)

    # Small batch: single grid step.
    x = jax.random.normal(xkey, (64, layers[0]), dtype=jnp.float32)
    out = jax.block_until_ready(model(x))
    assert out.shape == (64, layers[-1]) and out.dtype == jnp.float32
    ref = _reference_forward(x, model.params)
    assert jnp.allclose(out, ref, atol=1e-4, rtol=1e-4), float(jnp.max(jnp.abs(out - ref)))

    # Ragged batch (not a multiple of 128): exercises lane padding + a 2-step parallel grid.
    x2 = jax.random.normal(x2key, (777, layers[0]), dtype=jnp.float32)
    out2 = jax.block_until_ready(model(x2))
    assert out2.shape == (777, layers[-1])
    ref2 = _reference_forward(x2, model.params)
    assert jnp.allclose(out2, ref2, atol=1e-4, rtol=1e-4), float(jnp.max(jnp.abs(out2 - ref2)))

    # TODO(synk): the PDE-residual autograd (torch.autograd.grad) part of the PINN training
    # loop is outside this forward pass; use jax.grad around pinn_forward for that.
    print("KERNEL_OK")
</pallas_src>

<mosaic_0001>
module attributes {stable_mosaic.version = 11 : i64} {
  func.func @_fused_mlp_kernel(%arg0: i32, %arg1: memref<2x128xf32, #tpu.memory_space<vmem>>, %arg2: memref<32x2xf32, #tpu.memory_space<vmem>>, %arg3: memref<32x1xf32, #tpu.memory_space<vmem>>, %arg4: memref<32x32xf32, #tpu.memory_space<vmem>>, %arg5: memref<32x1xf32, #tpu.memory_space<vmem>>, %arg6: memref<32x32xf32, #tpu.memory_space<vmem>>, %arg7: memref<32x1xf32, #tpu.memory_space<vmem>>, %arg8: memref<32x1xf32, #tpu.memory_space<vmem>>, %arg9: memref<1x1xf32, #tpu.memory_space<vmem>>, %arg10: memref<1x128xf32, #tpu.memory_space<vmem>>) attributes {dimension_semantics = [#tpu.dimension_semantics<parallel>], iteration_bounds = array<i64: 1>, scalar_prefetch = 0 : i64, scratch_operands = 0 : i64, tpu.core_type = #tpu.core_type<tc>, window_params = [{transform_indices = @transform_0, window_bounds = array<i64: 2, 128>}, {pipeline_mode = #tpu.pipeline_mode<synchronous>, transform_indices = @transform_1, window_bounds = array<i64: 32, 2>}, {pipeline_mode = #tpu.pipeline_mode<synchronous>, transform_indices = @transform_2, window_bounds = array<i64: 32, 1>}, {pipeline_mode = #tpu.pipeline_mode<synchronous>, transform_indices = @transform_3, window_bounds = array<i64: 32, 32>}, {pipeline_mode = #tpu.pipeline_mode<synchronous>, transform_indices = @transform_4, window_bounds = array<i64: 32, 1>}, {pipeline_mode = #tpu.pipeline_mode<synchronous>, transform_indices = @transform_5, window_bounds = array<i64: 32, 32>}, {pipeline_mode = #tpu.pipeline_mode<synchronous>, transform_indices = @transform_6, window_bounds = array<i64: 32, 1>}, {pipeline_mode = #tpu.pipeline_mode<synchronous>, transform_indices = @transform_7, window_bounds = array<i64: 32, 1>}, {pipeline_mode = #tpu.pipeline_mode<synchronous>, transform_indices = @transform_8, window_bounds = array<i64: 1, 1>}, {transform_indices = @transform_9, window_bounds = array<i64: 1, 128>}]} {
    %c0 = arith.constant 0 : index
    %c0_0 = arith.constant 0 : index
    %0 = vector.load %arg1[%c0, %c0_0] : memref<2x128xf32, #tpu.memory_space<vmem>>, vector<2x128xf32>
    %c0_1 = arith.constant 0 : index
    %c0_2 = arith.constant 0 : index
    %1 = vector.load %arg2[%c0_1, %c0_2] : memref<32x2xf32, #tpu.memory_space<vmem>>, vector<32x2xf32>
    %c0_3 = arith.constant 0 : index
    %c0_4 = arith.constant 0 : index
    %2 = vector.load %arg3[%c0_3, %c0_4] : memref<32x1xf32, #tpu.memory_space<vmem>>, vector<32x1xf32>
    %3 = vector.extract_strided_slice %1 {offsets = [0, 0], sizes = [32, 1], strides = [1, 1]} : vector<32x2xf32> to vector<32x1xf32>
    %4 = vector.extract_strided_slice %0 {offsets = [0, 0], sizes = [1, 128], strides = [1, 1]} : vector<2x128xf32> to vector<1x128xf32>
    %5 = vector.broadcast %3 : vector<32x1xf32> to vector<32x128xf32>
    %6 = vector.broadcast %4 : vector<1x128xf32> to vector<32x128xf32>
    %7 = arith.mulf %5, %6 : vector<32x128xf32>
    %8 = vector.broadcast %2 : vector<32x1xf32> to vector<32x128xf32>
    %9 = arith.addf %8, %7 : vector<32x128xf32>
    %10 = vector.extract_strided_slice %1 {offsets = [0, 1], sizes = [32, 1], strides = [1, 1]} : vector<32x2xf32> to vector<32x1xf32>
    %11 = vector.extract_strided_slice %0 {offsets = [1, 0], sizes = [1, 128], strides = [1, 1]} : vector<2x128xf32> to vector<1x128xf32>
    %12 = vector.broadcast %10 : vector<32x1xf32> to vector<32x128xf32>
    %13 = vector.broadcast %11 : vector<1x128xf32> to vector<32x128xf32>
    %14 = arith.mulf %12, %13 : vector<32x128xf32>
    %15 = arith.addf %9, %14 : vector<32x128xf32>
    %16 = math.tanh %15 : vector<32x128xf32>
    %c0_5 = arith.constant 0 : index
    %c0_6 = arith.constant 0 : index
    %17 = vector.load %arg4[%c0_5, %c0_6] : memref<32x32xf32, #tpu.memory_space<vmem>>, vector<32x32xf32>
    %c0_7 = arith.constant 0 : index
    %c0_8 = arith.constant 0 : index
    %18 = vector.load %arg5[%c0_7, %c0_8] : memref<32x1xf32, #tpu.memory_space<vmem>>, vector<32x1xf32>
    %cst = arith.constant dense<0.000000e+00> : vector<32x128xf32>
    %19 = tpu.matmul %17, %16, %cst {dimension_numbers = #tpu.dot_dimension_numbers<[1], [0], [0], [1], [0, 0, 1, 1], [], []>} : vector<32x32xf32>, vector<32x128xf32>, vector<32x128xf32> -> vector<32x128xf32>
    %20 = vector.broadcast %18 : vector<32x1xf32> to vector<32x128xf32>
    %21 = arith.addf %19, %20 : vector<32x128xf32>
    %22 = math.tanh %21 : vector<32x128xf32>
    %c0_9 = arith.constant 0 : index
    %c0_10 = arith.constant 0 : index
    %23 = vector.load %arg6[%c0_9, %c0_10] : memref<32x32xf32, #tpu.memory_space<vmem>>, vector<32x32xf32>
    %c0_11 = arith.constant 0 : index
    %c0_12 = arith.constant 0 : index
    %24 = vector.load %arg7[%c0_11, %c0_12] : memref<32x1xf32, #tpu.memory_space<vmem>>, vector<32x1xf32>
    %cst_13 = arith.constant dense<0.000000e+00> : vector<32x128xf32>
    %25 = tpu.matmul %23, %22, %cst_13 {dimension_numbers = #tpu.dot_dimension_numbers<[1], [0], [0], [1], [0, 0, 1, 1], [], []>} : vector<32x32xf32>, vector<32x128xf32>, vector<32x128xf32> -> vector<32x128xf32>
    %26 = vector.broadcast %24 : vector<32x1xf32> to vector<32x128xf32>
    %27 = arith.addf %25, %26 : vector<32x128xf32>
    %28 = math.tanh %27 : vector<32x128xf32>
    %c0_14 = arith.constant 0 : index
    %c0_15 = arith.constant 0 : index
    %29 = vector.load %arg8[%c0_14, %c0_15] : memref<32x1xf32, #tpu.memory_space<vmem>>, vector<32x1xf32>
    %c0_16 = arith.constant 0 : index
    %c0_17 = arith.constant 0 : index
    %30 = vector.load %arg9[%c0_16, %c0_17] : memref<1x1xf32, #tpu.memory_space<vmem>>, vector<1x1xf32>
    %31 = vector.broadcast %29 : vector<32x1xf32> to vector<32x128xf32>
    %32 = arith.mulf %28, %31 : vector<32x128xf32>
    %cst_18 = arith.constant dense<0.000000e+00> : vector<128xf32>
    %33 = vector.multi_reduction <add>, %32, %cst_18 [0] : vector<32x128xf32> to vector<128xf32>
    %34 = vector.shape_cast %33 : vector<128xf32> to vector<1x128xf32>
    %35 = vector.broadcast %30 : vector<1x1xf32> to vector<1x128xf32>
    %36 = arith.addf %34, %35 : vector<1x128xf32>
    %c0_19 = arith.constant 0 : index
    %c0_20 = arith.constant 0 : index
    %37 = vector.load %arg10[%c0_19, %c0_20] : memref<1x128xf32, #tpu.memory_space<vmem>>, vector<1x128xf32>
    tpu.vector_store %arg10[%c0_19, %c0_20], %36 {strides = array<i32>} : memref<1x128xf32, #tpu.memory_space<vmem>>, vector<1x128xf32>,
    return
  }
  func.func @transform_0(%arg0: i32) -> (i32, i32) {
    %c0_i32 = arith.constant 0 : i32
    %c0_i32_0 = arith.constant 0 : i32
    return %c0_i32, %arg0 : i32, i32
  }
  func.func @transform_1(%arg0: i32) -> (i32, i32) {
    %c0_i32 = arith.constant 0 : i32
    %c0_i32_0 = arith.constant 0 : i32
    %c0_i32_1 = arith.constant 0 : i32
    return %c0_i32, %c0_i32_0 : i32, i32
  }
  func.func @transform_2(%arg0: i32) -> (i32, i32) {
    %c0_i32 = arith.constant 0 : i32
    %c0_i32_0 = arith.constant 0 : i32
    %c0_i32_1 = arith.constant 0 : i32
    return %c0_i32, %c0_i32_0 : i32, i32
  }
  func.func @transform_3(%arg0: i32) -> (i32, i32) {
    %c0_i32 = arith.constant 0 : i32
    %c0_i32_0 = arith.constant 0 : i32
    %c0_i32_1 = arith.constant 0 : i32
    return %c0_i32, %c0_i32_0 : i32, i32
  }
  func.func @transform_4(%arg0: i32) -> (i32, i32) {
    %c0_i32 = arith.constant 0 : i32
    %c0_i32_0 = arith.constant 0 : i32
    %c0_i32_1 = arith.constant 0 : i32
    return %c0_i32, %c0_i32_0 : i32, i32
  }
  func.func @transform_5(%arg0: i32) -> (i32, i32) {
    %c0_i32 = arith.constant 0 : i32
    %c0_i32_0 = arith.constant 0 : i32
    %c0_i32_1 = arith.constant 0 : i32
    return %c0_i32, %c0_i32_0 : i32, i32
  }
  func.func @transform_6(%arg0: i32) -> (i32, i32) {
    %c0_i32 = arith.constant 0 : i32
    %c0_i32_0 = arith.constant 0 : i32
    %c0_i32_1 = arith.constant 0 : i32
    return %c0_i32, %c0_i32_0 : i32, i32
  }
  func.func @transform_7(%arg0: i32) -> (i32, i32) {
    %c0_i32 = arith.constant 0 : i32
    %c0_i32_0 = arith.constant 0 : i32
    %c0_i32_1 = arith.constant 0 : i32
    return %c0_i32, %c0_i32_0 : i32, i32
  }
  func.func @transform_8(%arg0: i32) -> (i32, i32) {
    %c0_i32 = arith.constant 0 : i32
    %c0_i32_0 = arith.constant 0 : i32
    %c0_i32_1 = arith.constant 0 : i32
    return %c0_i32, %c0_i32_0 : i32, i32
  }
  func.func @transform_9(%arg0: i32) -> (i32, i32) {
    %c0_i32 = arith.constant 0 : i32
    %c0_i32_0 = arith.constant 0 : i32
    return %c0_i32, %arg0 : i32, i32
  }
}

</mosaic_0001>

<bundles_post_ra>
// kernel: tpu_custom_call.1
= control target key start
LH: loop header
LB: loop body
LE: loop exit
PB: predicated region body
PF: predicated region fallthrough
CT: control target
= control target key end

     0   :  { %s748_s0 = inlined_call_operand.vmem [shape: f32[2,128], index: 0, kind: input, shape index: {}]   ;;  %s749_s1 = inlined_call_operand.vmem [shape: f32[32,2], index: 1, kind: input, shape index: {}]   ;;  %s750_s2 = inlined_call_operand.vmem [shape: f32[32,1], index: 2, kind: input, shape index: {}]   ;;  %s751_s3 = inlined_call_operand.vmem [shape: f32[32,32], index: 3, kind: input, shape index: {}]   ;;  %s752_s4 = inlined_call_operand.vmem [shape: f32[32,1], index: 4, kind: input, shape index: {}]   ;;  %s753_s5 = inlined_call_operand.vmem [shape: f32[32,32], index: 5, kind: input, shape index: {}]   ;;  %s754_s6 = inlined_call_operand.vmem [shape: f32[32,1], index: 6, kind: input, shape index: {}]   ;;  %s755_s7 = inlined_call_operand.vmem [shape: f32[32,1], index: 7, kind: input, shape index: {}]   ;;  %s756_s8 = inlined_call_operand.<no memory space> [shape: f32[1,1], index: 8, kind: input, shape index: {}]   ;;  %s757_s9 = inlined_call_operand.hbm [shape: f32[1,128], index: 9, kind: output, shape index: {}]  }
   0x1   :  { %v14_v0 = vstv %s756_s8 }
   0x2   :  { %15 = vst [vmem:[#allocation2] sm:$0x1] %v14_v0 }
   0x3   :  { %v40_v1 = vld [vmem:[%s750_s2] sm:$0xff]  ;;  %v577_v3 = vmov 0   ;;  %v41_v4 = vld [vmem:[%s750_s2 + $0x8] sm:$0xff] }
   0x4   :  { %v36_v2 = vld [vmem:[%s749_s1] sm:$0xff]  ;;  %522 = vset.pattern.permute.xlu1 %v577_v3  ;;  %521 = vset.pattern.permute.xlu0 %v577_v3  ;;  %v37_v5 = vld [vmem:[%s749_s1 + $0x8] sm:$0xff] }
   0x5   :  { %74 = vperm.xlu1 %522, %v40_v1   ;;  %46 = vperm.xlu0 %521, %v36_v2  }
   0x6   :  { %16 = vsyncpa [#allocation4], 0  ;;  %v39_v6 = vld [vmem:[%s749_s1 + $0x18] sm:$0xff]  ;;  %v578_v7 = vmov 1   ;;  %v38_v8 = vld [vmem:[%s749_s1 + $0x10] sm:$0xff]  ;;  %vm156_vm0 = vcmask 261120   ;;  %v64_v25 = vlaneseq }
   0x7   :  { %v42_v9 = vld [vmem:[%s750_s2 + $0x10] sm:$0xff]  ;;  %v43_v10 = vld [vmem:[%s750_s2 + $0x18] sm:$0xff]  ;;  %v128_v11 = vld [vmem:[%s751_s3] sm:$0xff] }
   0x8   :  { %482 = vmatprep.mubr.msk.f32.mxu0 %vm156_vm0, %v128_v11  ;;  %v132_v12 = vld [vmem:[%s752_s4] sm:$0xff]  ;;  %v133_v13 = vld [vmem:[%s752_s4 + $0x8] sm:$0xff]  ;;  %v134_v14 = vld [vmem:[%s752_s4 + $0x10] sm:$0xff]  ;;  %v697_v26 = vshrl.u32 %v64_v25, 7 }
   0x9   :  { %79 = vperm.xlu1 %522, %v41_v4   ;;  %51 = vperm.xlu0 %521, %v37_v5   ;;  %v262_v15 = vld [vmem:[%s754_s6] sm:$0xff]  ;;  %v135_v16 = vld [vmem:[%s752_s4 + $0x18] sm:$0xff]  ;;  %v264_v17 = vld [vmem:[%s754_s6 + $0x10] sm:$0xff] }
   0xa   :  { %v263_v18 = vld [vmem:[%s754_s6 + $0x8] sm:$0xff]  ;;  %v387_v19 = vld [vmem:[%s755_s7] sm:$0xff]  ;;  %v265_v20 = vld [vmem:[%s754_s6 + $0x18] sm:$0xff]  ;;  %v66_v29 = vsub.s32 0, %v697_v26  ;;  %v114_v31 = vsub.s32 1, %v697_v26 }
   0xb   :  { %v389_v21 = vld [vmem:[%s755_s7 + $0x10] sm:$0xff]  ;;  %v388_v22 = vld [vmem:[%s755_s7 + $0x8] sm:$0xff]  ;;  %v391_v23 = vld [vmem:[#allocation2] sm:$0x1] }
   0xc   :  { %v390_v24 = vld [vmem:[%s755_s7 + $0x18] sm:$0xff]  ;;  %v35_v30 = vld [vmem:[%s748_s0] sm:$0x3]  ;;  %v260_v25 = vld [vmem:[%s753_s5 + $0x10] sm:$0xff] }
   0xd   :  { %523 = vset.pattern.permute.xlu1 %v578_v7  ;;  %61 = vperm.xlu0 %521, %v39_v6   ;;  %v67_v34 = vrot.slane %v35_v30, %v66_v29  ;;  %v115_v35 = vrot.slane %v35_v30, %v114_v31  ;;  %v131_v4 = vld [vmem:[%s751_s3 + $0x18] sm:$0xff] }
   0xe   :  { %101 = vperm.xlu1 %523, %v37_v5   ;;  %v258_v5 = vld [vmem:[%s753_s5] sm:$0xff] }
   0xf   :  { %496 = vmatprep.mubr.msk.f32.mxu1 %vm156_vm0, %v258_v5 }
  0x11   :  { %525 = vset.pattern.permute.xlu0 %v578_v7 }
  0x12   :  { %524 = vset.pattern.permute.xlu1 %v577_v3  ;;  %97 = vperm.xlu0 %525, %v36_v2   ;;  %v129_v2 = vld [vmem:[%s751_s3 + $0x8] sm:$0xff] }
  0x13   :  { %56 = vperm.xlu1 %524, %v38_v8  }
  0x16   :  { %105 = vperm.xlu0 %525, %v38_v8  }
  0x17   :  { %84 = vperm.xlu1 %524, %v42_v9  }
  0x1a   :  { %528 = vset.pattern.permute.xlu0 %v577_v3 }
  0x1b   :  { %89 = vperm.xlu1 %524, %v43_v10   ;;  %143 = vperm.xlu0 %528, %v133_v13  }
  0x1f   :  { %526 = vset.pattern.permute.xlu1 %v578_v7  ;;  %268 = vperm.xlu0 %528, %v262_v15  }
  0x20   :  { %109 = vperm.xlu1 %526, %v39_v6  }
  0x23   :  { %278 = vperm.xlu0 %528, %v264_v17  }
  0x24   :  { %527 = vset.pattern.permute.xlu1 %v577_v3  ;;  %v130_v3 = vld [vmem:[%s751_s3 + $0x10] sm:$0xff] }
  0x25   :  { %138 = vperm.xlu1 %527, %v132_v12  }
  0x27   :  { %394 = vperm.xlu0 %528, %v387_v19  }
  0x29   :  { %148 = vperm.xlu1 %527, %v134_v14  }
  0x2b   :  { %404 = vperm.xlu0 %528, %v389_v21  }
  0x2d   :  { %153 = vperm.xlu1 %527, %v135_v16  }
  0x2f   :  { %427 = vperm.xlu0 %528, %v391_v23  }
  0x31   :  { %273 = vperm.xlu1 %527, %v263_v18  }
  0x35   :  { %283 = vperm.xlu1 %527, %v265_v20  }
  0x39   :  { %399 = vperm.xlu1 %527, %v388_v22  }
  0x3d   :  { %409 = vperm.xlu1 %527, %v390_v24   ;;  %v259_v24 = vld [vmem:[%s753_s5 + $0x8] sm:$0xff] }
  0x84   :  { %v75_v27 = vpop.permute.xlu1 %74  ;;  %v47_v28 = vpop.permute.xlu0 %46 }
  0x85   :  { %v68_v39 = vmul.f32 %v67_v34, %v47_v28 }
  0x87   :  { %v92_v44 = vadd.f32 %v75_v27, %v68_v39  ;;  %v261_v27 = vld [vmem:[%s753_s5 + $0x18] sm:$0xff]  ;;  %s579_s5 = smov [#allocation3]  }
  0x88   :  { %v80_v32 = vpop.permute.xlu1 %79  ;;  %v52_v33 = vpop.permute.xlu0 %51  ;;  %s442_s16 = sshll.u32 %s579_s5, 4  ;;  %s443_s16 = int_to_ptr.vmem [resolvable:$true] %s442_s16 }
  0x89   :  { %v69_v36 = vmul.f32 %v67_v34, %v52_v33  ;;  %s553_s17 = scalar_lea.vmem %s443_s16, 16  ;;  %s557_s8 = scalar_lea.vmem %s443_s16, 32 }
  0x8a   :  { %p554_p0 = scmp.ne.s32.totalorder %s443_s16, %s553_s17  ;;  %p558_p1 = scmp.lt.s32.totalorder %s443_s16, %s443_s16 }
  0x8b   :  { %v93_v41 = vadd.f32 %v80_v32, %v69_v36  ;;  %p559_p2 = scmp.lt.s32.totalorder %s557_s8, %s553_s17 }
  0x8c   :  { %v62_v37 = vpop.permute.xlu0 %61 }
  0x8d   :  { %v102_v38 = vpop.permute.xlu1 %101  ;;  %v71_v54 = vmul.f32 %v67_v34, %v62_v37  ;;  %p560_p3 = por %p559_p2, %p558_p1 }
  0x8e   :  { %v117_v40 = vmul.f32 %v115_v35, %v102_v38 }
  0x8f   :  { %p561_p4 = pnand %p560_p3, %p554_p0 }
  0x90   :  { %v121_v42 = vadd.f32 %v117_v40, %v93_v41 }
  0x91   :  { %v98_v43 = vpop.permute.xlu0 %97 }
  0x92   :  { %v116_v45 = vmul.f32 %v115_v35, %v98_v43  ;;  %v57_v46 = vpop.permute.xlu1 %56  ;;  %529 = vtanh.f32 %v121_v42 }
  0x93   :  { %v70_v50 = vmul.f32 %v67_v34, %v57_v46 }
  0x94   :  { %v120_v47 = vadd.f32 %v116_v45, %v92_v44 }
  0x95   :  { %v106_v49 = vpop.permute.xlu0 %105 }
  0x96   :  { %531 = vtanh.f32 %v120_v47  ;;  %v85_v48 = vpop.permute.xlu1 %84  ;;  %v118_v53 = vmul.f32 %v115_v35, %v106_v49 }
  0x97   :  { %v94_v52 = vadd.f32 %v85_v48, %v70_v50 }
  0x99   :  { %v122_v56 = vadd.f32 %v118_v53, %v94_v52 }
  0x9a   :  { %v90_v51 = vpop.permute.xlu1 %89  ;;  %v144_v8 = vpop.permute.xlu0 %143 }
  0x9b   :  { %v95_v59 = vadd.f32 %v90_v51, %v71_v54  ;;  %533 = vtanh.f32 %v122_v56 }
  0x9c   :  { %v530_v55 = vpop.eup %529 }
  0x9e   :  { %v269_v30 = vpop.permute.xlu0 %268 }
  0x9f   :  { %v110_v57 = vpop.permute.xlu1 %109 }
  0xa0   :  { %v532_v58 = vpop.eup %531  ;;  %v119_v60 = vmul.f32 %v115_v35, %v110_v57 }
  0xa1   :  { %v502_v61 = vpack.c.bf16 %v530_v55, %v532_v58 }
  0xa2   :  { %v123_v62 = vadd.f32 %v119_v60, %v95_v59  ;;  %v279_v37 = vpop.permute.xlu0 %278 }
  0xa3   :  { %503 = vmatprep.subr.bf16.mxu0 %v502_v61 }
  0xa4   :  { %535 = vtanh.f32 %v123_v62  ;;  %505 = vmatpush3.bf16.msra.mxu0 %v502_v61  ;;  %v139_v6 = vpop.permute.xlu1 %138 }
  0xa5   :  { %v534_v63 = vpop.eup %533 }
  0xa6   :  { %v395_v41 = vpop.permute.xlu0 %394 }
  0xa8   :  { %v149_v7 = vpop.permute.xlu1 %148 }
  0xaa   :  { %v405_v50 = vpop.permute.xlu0 %404 }
  0xac   :  { %v154_v13 = vpop.permute.xlu1 %153 }
  0xae   :  { %v536_v0 = vpop.eup %535  ;;  %v428_v60 = vpop.permute.xlu0 %427 }
  0xaf   :  { %v506_v1 = vpack.c.bf16 %v536_v0, %v534_v63  ;;  %v433_v62 = vrot.slane %v428_v60, %v66_v29 }
  0xb0   :  { %v274_v28 = vpop.permute.xlu1 %273 }
  0xb1   :  { %507 = vmatprep.subr.bf16.mxu0 %v506_v1 }
  0xb2   :  { %509 = vmatpush3.bf16.msra.mxu0 %v506_v1 }
  0xb4   :  { %v284_v35 = vpop.permute.xlu1 %283 }
  0xb5   :  { %483 = vmatmul.mubr.msk.f32.vlgmr.msra.gmra.mrb[0].mxu0 %vm156_vm0, %v129_v2 }
  0xb6   :  { %485 = vmatprep.mubr.msk.f32.mxu0 %vm156_vm0, %v130_v3 }
  0xb8   :  { %v400_v43 = vpop.permute.xlu1 %399 }
  0xb9   :  { %486 = vmatmul.mubr.msk.f32.gmra.mrb[2].mxu0 %vm156_vm0, %v131_v4 }
  0xbc   :  { %v410_v52 = vpop.permute.xlu1 %409 }
 0x188   :  { %v484_v9 = vpop.f32.mrb[0].mxu0 }
 0x189   :  { %v241_v10 = vadd.f32 %v484_v9, %v144_v8  ;;  %v235_v11 = vpop.f32.mrb[1].mxu0 }
 0x18a   :  { %v236_v12 = vadd.f32 %v235_v11, %v139_v6 }
 0x18b   :  { %537 = vtanh.f32 %v241_v10 }
 0x18c   :  { %539 = vtanh.f32 %v236_v12  ;;  %v487_v14 = vpop.f32.mrb[2].mxu0 }
 0x18d   :  { %v251_v15 = vadd.f32 %v487_v14, %v154_v13  ;;  %v245_v16 = vpop.f32.mrb[3].mxu0 }
 0x18e   :  { %v246_v17 = vadd.f32 %v245_v16, %v149_v7 }
 0x18f   :  { %541 = vtanh.f32 %v251_v15 }
 0x190   :  { %543 = vtanh.f32 %v246_v17 }
 0x195   :  { %v538_v18 = vpop.eup %537 }
 0x196   :  { %v540_v19 = vpop.eup %539 }
 0x197   :  { %v510_v20 = vpack.c.bf16 %v538_v18, %v540_v19 }
 0x199   :  { %v542_v21 = vpop.eup %541  ;;  %511 = vmatprep.subr.bf16.mxu1 %v510_v20 }
 0x19a   :  { %v544_v22 = vpop.eup %543  ;;  %513 = vmatpush3.bf16.msra.mxu1 %v510_v20 }
 0x19b   :  { %v514_v23 = vpack.c.bf16 %v542_v21, %v544_v22 }
 0x19d   :  { %515 = vmatprep.subr.bf16.mxu1 %v514_v23 }
 0x19e   :  { %517 = vmatpush3.bf16.msra.mxu1 %v514_v23 }
 0x1a1   :  { %497 = vmatmul.mubr.msk.f32.vlgmr.msra.gmra.mrb[0].mxu1 %vm156_vm0, %v259_v24 }
 0x1a2   :  { %499 = vmatprep.mubr.msk.f32.mxu1 %vm156_vm0, %v260_v25 }
 0x1a5   :  { %500 = vmatmul.mubr.msk.f32.gmra.mrb[2].mxu1 %vm156_vm0, %v261_v27 }
 0x274   :  { %v498_v31 = vpop.f32.mrb[0].mxu1 }
 0x275   :  { %v370_v32 = vadd.f32 %v498_v31, %v274_v28  ;;  %v364_v33 = vpop.f32.mrb[1].mxu1 }
 0x276   :  { %v365_v34 = vadd.f32 %v364_v33, %v269_v30 }
 0x277   :  { %545 = vtanh.f32 %v370_v32 }
 0x278   :  { %547 = vtanh.f32 %v365_v34  ;;  %v501_v36 = vpop.f32.mrb[2].mxu1 }
 0x279   :  { %v380_v38 = vadd.f32 %v501_v36, %v284_v35  ;;  %v374_v39 = vpop.f32.mrb[3].mxu1 }
 0x27a   :  { %v375_v40 = vadd.f32 %v374_v39, %v279_v37 }
 0x27b   :  { %549 = vtanh.f32 %v380_v38 }
 0x27c   :  { %551 = vtanh.f32 %v375_v40 }
 0x281   :  { %v546_v42 = vpop.eup %545 }
 0x282   :  { %v548_v44 = vpop.eup %547  ;;  %v413_v45 = vmul.f32 %v546_v42, %v400_v43 }
 0x283   :  { %v412_v46 = vmul.f32 %v548_v44, %v395_v41 }
 0x285   :  { %v550_v47 = vpop.eup %549  ;;  %v416_v48 = vadd.f32 %v413_v45, %v412_v46 }
 0x286   :  { %v552_v49 = vpop.eup %551  ;;  %v415_v53 = vmul.f32 %v550_v47, %v410_v52 }
 0x287   :  { %v414_v51 = vmul.f32 %v552_v49, %v405_v50 }
 0x289   :  { %v417_v54 = vadd.f32 %v416_v48, %v414_v51 }
 0x28b   :  { %v418_v55 = vadd.f32 %v417_v54, %v415_v53 }
 0x28d   :  { %v419_v56 = vrot.slane %v418_v55, 4 }
 0x28f   :  { %v420_v57 = vadd.f32 %v419_v56, %v418_v55 }
 0x291   :  { %v421_v58 = vrot.slane %v420_v57, 2 }
 0x293   :  { %v422_v59 = vadd.f32 %v421_v58, %v420_v57 }
 0x295   :  { %v423_v61 = vrot.slane %v422_v59, 1 }
 0x297   :  { %v424_v63 = vadd.f32 %v423_v61, %v422_v59 }
 0x299   :  { %v434_v0 = vadd.f32 %v433_v62, %v424_v63 }
 0x29b   :  { %435 = vst [vmem:[#allocation3] sm:$0x1] %v434_v0 }
 0x29c   :  { %564 = shalt.err (!%p561_p4)
}
 0x29d   :  { %s565_s20 = scalar_lea.hbm %s757_s9, 16 }
 0x29e   :  { %p566_p5 = scmp.ne.s32.totalorder %s757_s9, %s565_s20  ;;  %p569_p6 = scmp.lt.u32.totalorder %s565_s20, %s757_s9 }
 0x2a0   :  { %p571_p7 = pnand %p569_p6, %p566_p5 }
 0x2a2   :  { %574 = shalt.err (!%p571_p7)
}
 0x2a3   :  { %445 = dma.vmem_to_hbm [thread:$0]  %s443_s16, 16, %s757_s9, [#allocation4]  }
 0x2a4   :  { %575 = dma.done.wait [#allocation4], 16  }
 0x2a5   :  { %576 = vsyncadd [#allocation4], 4294967280 }
 0x2a6   :  { %449 = vsyncpa [#allocation4], 1 }

</bundles_post_ra>
